<compile_context>
chip_gen: v6e
topology: v6e:2x2x1
jax: 0.10.0
libtpu: 0.0.40
codegen_flags: <defaults>
</compile_context>

<pallas_src>
import functools

import jax
import jax.numpy as jnp
from jax.experimental import pallas as pl
from jax.experimental.pallas import tpu as pltpu


def _tokens_select_kernel(x_ref, w1_ref, b1_ref, w2_ref, noise_ref, out_ref,
                          *, inv_tau, hard):
    """One grid step: `rows_tile` packed rows (= rows_tile * P tokens).

    x_ref     : (rows_tile, P*E)  bf16   P tokens packed per 128-lane row
    w1_ref    : (P*E, P*H)        bf16   block_diag(W1, ..., W1)
    b1_ref    : (1,   P*H)        f32    b1 tiled P times
    w2_ref    : (P*H, P)          bf16   block_diag(w2, ..., w2)
    noise_ref : (rows_tile, P)    f32    (g1 - g2) + b2, one value per token
    out_ref   : (rows_tile, P)    f32
    """
    # mlp: relu(x @ W1 + b1) for P tokens at once (bf16 MXU, f32 accumulate,
    # f32 bias/relu epilogue).
    h = jnp.dot(x_ref[...], w1_ref[...], preferred_element_type=jnp.float32)
    h = jnp.maximum(h + b1_ref[...], 0.0)

    # fc: block-diagonal w2 contracts each token's own H lanes -> (rows, P)
    # per-token logits, still in packed layout (no cross-lane relayout).
    logits = jnp.dot(h.astype(jnp.bfloat16), w2_ref[...],
                     preferred_element_type=jnp.float32)

    # gumbel_sigmoid(tau); noise already carries the fc bias b2.
    y = jax.nn.sigmoid((logits + noise_ref[...]) * inv_tau)
    if hard:
        y = (y > 0.5).astype(jnp.float32)
    out_ref[...] = y.astype(out_ref.dtype)


def _round_up(n, m):
    return ((n + m - 1) // m) * m


def _gumbel_diff(key, n):
    """Pre-sampled gumbel noise difference (g1 - g2), one value per token."""
    k1, k2 = jax.random.split(key)
    return (jax.random.gumbel(k1, (n,), jnp.float32)
            - jax.random.gumbel(k2, (n,), jnp.float32))


def _pack_params(w1, b1, w2, p):
    """Block-diagonal replication so one matmul processes p tokens per row."""
    eye = jnp.eye(p, dtype=jnp.float32)
    w1p = jnp.kron(eye, w1.astype(jnp.float32))           # (p*E, p*H)
    w2p = jnp.kron(eye, w2.astype(jnp.float32))           # (p*H, p)
    b1p = jnp.tile(b1.reshape(1, -1).astype(jnp.float32), (1, p))  # (1, p*H)
    return w1p.astype(jnp.bfloat16), b1p, w2p.astype(jnp.bfloat16)


def tokens_select(x, params, key, *, tau=5.0, hard=True, random=False,
                  random_ratio=0.6, tm=2048):
    """x: (B, N, E). params: (w1 (E,H), b1 (H,), w2 (H,1), b2 (1,))."""
    B, N, E = x.shape
    T = B * N
    w1, b1, w2, b2 = params
    H = w1.shape[1]

    if random:
        # get_random_policy: forward value is the Bernoulli(ratio) sample
        # ("+ policy * 0.0" only matters for gradients) -> no kernel launch,
        # no x / weight traffic at all.
        return jax.random.bernoulli(
            key, random_ratio, (B, N, 1)).astype(jnp.float32)

    # Tokens packed per 128-lane row (4 when E == 32); falls back to 1 when
    # E does not divide 128.
    P = 128 // E if (E <= 128 and 128 % E == 0) else 1

    # Tile size in tokens: multiple of 128, clamped to the token count, and
    # split into >= 2 tiles when possible so v7x's second TensorCore has work.
    tm = max(128, min(_round_up(tm, 128), _round_up(T, 128)))
    if T >= 256:
        tm = min(tm, _round_up((T + 1) // 2, 128))
    rows_tile = tm // P

    # Only pad to a multiple of the packing factor (<= P-1 tokens, zeros so
    # the block-diagonal matmul cannot pick up NaN/Inf garbage).  The partial
    # final grid block is handled by Pallas and trimmed with [:T] below.
    Tp = _round_up(T, P)
    rows_total = Tp // P

    x2 = x.reshape(T, E).astype(jnp.bfloat16)
    noise = (_gumbel_diff(key, T) + b2.astype(jnp.float32)[0])
    if Tp != T:  # only when B*N % P != 0
        x2 = jnp.pad(x2, ((0, Tp - T), (0, 0)))
        noise = jnp.pad(noise, (0, Tp - T))
    x2 = x2.reshape(rows_total, P * E)          # free reshape (row-major)
    noise = noise.reshape(rows_total, P).astype(jnp.float32)

    w1p, b1p, w2p = _pack_params(w1, b1, w2, P)

    kernel = functools.partial(_tokens_select_kernel,
                               inv_tau=float(1.0 / tau), hard=bool(hard))

    out = pl.pallas_call(
        kernel,
        out_shape=jax.ShapeDtypeStruct((rows_total, P), jnp.float32),
        grid=(pl.cdiv(rows_total, rows_tile),),
        in_specs=[
            pl.BlockSpec((rows_tile, P * E), lambda i: (i, 0)),  # packed x
            pl.BlockSpec((P * E, P * H), lambda i: (0, 0)),      # blkdiag W1
            pl.BlockSpec((1, P * H), lambda i: (0, 0)),          # tiled b1
            pl.BlockSpec((P * H, P), lambda i: (0, 0)),          # blkdiag w2
            pl.BlockSpec((rows_tile, P), lambda i: (i, 0)),      # noise + b2
        ],
        out_specs=pl.BlockSpec((rows_tile, P), lambda i: (i, 0)),
        compiler_params=pltpu.CompilerParams(
            dimension_semantics=("parallel",)),
    )(x2, w1p, b1p, w2p, noise)

    # Packed (rows, P) -> token order is plain row-major flatten.
    return out.reshape(Tp, 1)[:T].reshape(B, N, 1)


if __name__ == "__main__":
    # Small shapes consistent with the module: batch=2, num_patches=64,
    # num_embeddings=32, hidden_sz=32.
    B, N, E, H = 2, 64, 32, 32
    tau = 5.0

    key = jax.random.PRNGKey(0)
    k_x, k_w1, k_b1, k_w2, k_b2, k_noise = jax.random.split(key, 6)

    x = jax.random.normal(k_x, (B, N, E), dtype=jnp.float32)

    # Deterministic Linear-style init (uniform in +/- 1/sqrt(fan_in)).
    bound1 = 1.0 / (E ** 0.5)
    w1 = jax.random.uniform(k_w1, (E, H), minval=-bound1, maxval=bound1,
                            dtype=jnp.float32)
    b1 = jax.random.uniform(k_b1, (H,), minval=-bound1, maxval=bound1,
                            dtype=jnp.float32)
    bound2 = 1.0 / (H ** 0.5)
    w2 = jax.random.uniform(k_w2, (H, 1), minval=-bound2, maxval=bound2,
                            dtype=jnp.float32)
    b2 = jax.random.uniform(k_b2, (1,), minval=-bound2, maxval=bound2,
                            dtype=jnp.float32)

    params = (w1, b1, w2, b2)

    hard_mask = tokens_select(x, params, k_noise, tau=tau, hard=True)
    soft_mask = tokens_select(x, params, k_noise, tau=tau, hard=False)
    rand_mask = tokens_select(x, params, k_noise, tau=tau, hard=True,
                              random=True, random_ratio=0.6)
    jax.block_until_ready((hard_mask, soft_mask, rand_mask))

    assert hard_mask.shape == (B, N, 1)
    assert hard_mask.dtype == jnp.float32
    assert rand_mask.shape == (B, N, 1)
    assert bool(jnp.all((rand_mask == 0.0) | (rand_mask == 1.0)))

    # Pure-JAX f32 reference using the identical pre-sampled noise (bf16 MXU
    # operands in the kernel -> tolerance loosened vs. the old 1e-4).
    T = B * N
    noise = _gumbel_diff(k_noise, T)
    h_ref = jnp.maximum(x.reshape(T, E) @ w1 + b1, 0.0)
    logits_ref = (h_ref @ w2)[:, 0] + b2[0]
    y_ref = jax.nn.sigmoid((logits_ref + noise) / tau).reshape(B, N, 1)
    assert jnp.allclose(soft_mask, y_ref, atol=1e-2, rtol=1e-2)

    # hard mask is {0,1} and consistent with thresholding the soft output.
    assert bool(jnp.all((hard_mask == 0.0) | (hard_mask == 1.0)))
    assert bool(jnp.array_equal(hard_mask,
                                (soft_mask > 0.5).astype(jnp.float32)))

    print("KERNEL_OK")
</pallas_src>

<mosaic_0001>
module attributes {stable_mosaic.version = 11 : i64} {
  func.func @_tokens_select_kernel(%arg0: i32, %arg1: memref<32x128xbf16, #tpu.memory_space<vmem>>, %arg2: memref<128x128xbf16, #tpu.memory_space<vmem>>, %arg3: memref<1x128xf32, #tpu.memory_space<vmem>>, %arg4: memref<128x4xbf16, #tpu.memory_space<vmem>>, %arg5: memref<32x4xf32, #tpu.memory_space<vmem>>, %arg6: memref<32x4xf32, #tpu.memory_space<vmem>>) attributes {dimension_semantics = [#tpu.dimension_semantics<parallel>], iteration_bounds = array<i64: 1>, scalar_prefetch = 0 : i64, scratch_operands = 0 : i64, tpu.core_type = #tpu.core_type<tc>, window_params = [{transform_indices = @transform_0, window_bounds = array<i64: 32, 128>}, {pipeline_mode = #tpu.pipeline_mode<synchronous>, transform_indices = @transform_1, window_bounds = array<i64: 128, 128>}, {pipeline_mode = #tpu.pipeline_mode<synchronous>, transform_indices = @transform_2, window_bounds = array<i64: 1, 128>}, {pipeline_mode = #tpu.pipeline_mode<synchronous>, transform_indices = @transform_3, window_bounds = array<i64: 128, 4>}, {transform_indices = @transform_4, window_bounds = array<i64: 32, 4>}, {transform_indices = @transform_5, window_bounds = array<i64: 32, 4>}]} {
    %c0 = arith.constant 0 : index
    %c0_0 = arith.constant 0 : index
    %0 = vector.load %arg1[%c0, %c0_0] : memref<32x128xbf16, #tpu.memory_space<vmem>>, vector<32x128xbf16>
    %c0_1 = arith.constant 0 : index
    %c0_2 = arith.constant 0 : index
    %1 = vector.load %arg2[%c0_1, %c0_2] : memref<128x128xbf16, #tpu.memory_space<vmem>>, vector<128x128xbf16>
    %cst = arith.constant dense<0.000000e+00> : vector<32x128xf32>
    %2 = tpu.matmul %0, %1, %cst {dimension_numbers = #tpu.dot_dimension_numbers<[1], [0], [0], [1], [0, 0, 1, 1], [], []>} : vector<32x128xbf16>, vector<128x128xbf16>, vector<32x128xf32> -> vector<32x128xf32>
    %c0_3 = arith.constant 0 : index
    %c0_4 = arith.constant 0 : index
    %3 = vector.load %arg3[%c0_3, %c0_4] : memref<1x128xf32, #tpu.memory_space<vmem>>, vector<1x128xf32>
    %4 = vector.broadcast %3 : vector<1x128xf32> to vector<32x128xf32>
    %5 = arith.addf %2, %4 : vector<32x128xf32>
    %cst_5 = arith.constant 0.000000e+00 : f32
    %6 = vector.broadcast %cst_5 : f32 to vector<32x128xf32>
    %7 = arith.maximumf %5, %6 : vector<32x128xf32>
    %8 = arith.truncf %7 : vector<32x128xf32> to vector<32x128xbf16>
    %c0_6 = arith.constant 0 : index
    %c0_7 = arith.constant 0 : index
    %9 = vector.load %arg4[%c0_6, %c0_7] : memref<128x4xbf16, #tpu.memory_space<vmem>>, vector<128x4xbf16>
    %cst_8 = arith.constant dense<0.000000e+00> : vector<32x4xf32>
    %10 = tpu.matmul %8, %9, %cst_8 {dimension_numbers = #tpu.dot_dimension_numbers<[1], [0], [0], [1], [0, 0, 1, 1], [], []>} : vector<32x128xbf16>, vector<128x4xbf16>, vector<32x4xf32> -> vector<32x4xf32>
    %c0_9 = arith.constant 0 : index
    %c0_10 = arith.constant 0 : index
    %11 = vector.load %arg5[%c0_9, %c0_10] : memref<32x4xf32, #tpu.memory_space<vmem>>, vector<32x4xf32>
    %12 = arith.addf %10, %11 : vector<32x4xf32>
    %cst_11 = arith.constant 2.000000e-01 : f32
    %13 = vector.broadcast %cst_11 : f32 to vector<32x4xf32>
    %14 = arith.mulf %12, %13 : vector<32x4xf32>
    %15 = arith.negf %14 : vector<32x4xf32>
    %16 = math.exp %15 : vector<32x4xf32>
    %cst_12 = arith.constant 1.000000e+00 : f32
    %17 = vector.broadcast %cst_12 : f32 to vector<32x4xf32>
    %18 = arith.addf %17, %16 : vector<32x4xf32>
    %19 = arith.divf %17, %18 : vector<32x4xf32>
    %cst_13 = arith.constant 5.000000e-01 : f32
    %20 = vector.broadcast %cst_13 : f32 to vector<32x4xf32>
    %21 = arith.cmpf ogt, %19, %20 : vector<32x4xf32>
    %22 = arith.extui %21 : vector<32x4xi1> to vector<32x4xi32>
    %23 = arith.sitofp %22 : vector<32x4xi32> to vector<32x4xf32>
    %c0_14 = arith.constant 0 : index
    %c0_15 = arith.constant 0 : index
    %24 = vector.load %arg6[%c0_14, %c0_15] : memref<32x4xf32, #tpu.memory_space<vmem>>, vector<32x4xf32>
    tpu.vector_store %arg6[%c0_14, %c0_15], %23 {strides = array<i32>} : memref<32x4xf32, #tpu.memory_space<vmem>>, vector<32x4xf32>,
    return
  }
  func.func @transform_0(%arg0: i32) -> (i32, i32) {
    %c0_i32 = arith.constant 0 : i32
    %c0_i32_0 = arith.constant 0 : i32
    return %arg0, %c0_i32 : i32, i32
  }
  func.func @transform_1(%arg0: i32) -> (i32, i32) {
    %c0_i32 = arith.constant 0 : i32
    %c0_i32_0 = arith.constant 0 : i32
    %c0_i32_1 = arith.constant 0 : i32
    return %c0_i32, %c0_i32_0 : i32, i32
  }
  func.func @transform_2(%arg0: i32) -> (i32, i32) {
    %c0_i32 = arith.constant 0 : i32
    %c0_i32_0 = arith.constant 0 : i32
    %c0_i32_1 = arith.constant 0 : i32
    return %c0_i32, %c0_i32_0 : i32, i32
  }
  func.func @transform_3(%arg0: i32) -> (i32, i32) {
    %c0_i32 = arith.constant 0 : i32
    %c0_i32_0 = arith.constant 0 : i32
    %c0_i32_1 = arith.constant 0 : i32
    return %c0_i32, %c0_i32_0 : i32, i32
  }
  func.func @transform_4(%arg0: i32) -> (i32, i32) {
    %c0_i32 = arith.constant 0 : i32
    %c0_i32_0 = arith.constant 0 : i32
    return %arg0, %c0_i32 : i32, i32
  }
  func.func @transform_5(%arg0: i32) -> (i32, i32) {
    %c0_i32 = arith.constant 0 : i32
    %c0_i32_0 = arith.constant 0 : i32
    return %arg0, %c0_i32 : i32, i32
  }
}

</mosaic_0001>

<bundles_post_ra>
// kernel: tpu_custom_call.1
= control target key start
LH: loop header
LB: loop body
LE: loop exit
PB: predicated region body
PF: predicated region fallthrough
CT: control target
= control target key end

     0   :  { %vm320_vm0 = vcmask 31744   ;;  %v451_v63 = vmov 0.0   ;;  %s567_s1 = inlined_call_operand.vmem [shape: bf16[128,128], index: 1, kind: input, shape index: {}]   ;;  %s568_s0 = inlined_call_operand.vmem [shape: bf16[32,128], index: 0, kind: input, shape index: {}]   ;;  %s569_s3 = inlined_call_operand.vmem [shape: bf16[128,4], index: 3, kind: input, shape index: {}]   ;;  %s570_s2 = inlined_call_operand.vmem [shape: f32[1,128], index: 2, kind: input, shape index: {}]   ;;  %s571_s4 = inlined_call_operand.vmem [shape: f32[32,4], index: 4, kind: input, shape index: {}]   ;;  %s572_s5 = inlined_call_operand.vmem [shape: f32[32,4], index: 5, kind: output, shape index: {}]  }
   0x1   :  { %v417_v0 = vld [vmem:[%s567_s1 + $0x38] sm:$0xff]   ;;  %v418_v1 = vld [vmem:[%s567_s1 + $0x30] sm:$0xff]   ;;  %v419_v2 = vld [vmem:[%s567_s1 + $0x28] sm:$0xff]  }
   0x2   :  { %376 = vmatprep.subr.bf16.mxu0 %v417_v0  ;;  %v420_v3 = vld [vmem:[%s567_s1 + $0x20] sm:$0xff]   ;;  %v427_v5 = vld [vmem:[%s569_s3 + $0x38] sm:$0xff]   ;;  %v428_v6 = vld [vmem:[%s569_s3 + $0x30] sm:$0xff]  }
   0x3   :  { %377 = vmatpush3.bf16.msra.mxu0 %v417_v0  ;;  %v425_v4 = vld [vmem:[%s568_s0] sm:$0xff]   ;;  %v421_v7 = vld [vmem:[%s567_s1 + $0x18] sm:$0xff]   ;;  %396 = vmatprep.subr.bf16.mxu1 %v427_v5  ;;  %v422_v8 = vld [vmem:[%s567_s1 + $0x10] sm:$0xff]  }
   0x4   :  { %378 = vmatprep.subr.bf16.mxu0 %v418_v1  ;;  %392 = vmatprep.mubr.bf16.mxu0 %v425_v4  ;;  %v429_v9 = vld [vmem:[%s569_s3 + $0x28] sm:$0xff]   ;;  %v430_v10 = vld [vmem:[%s569_s3 + $0x20] sm:$0xff]   ;;  %v431_v12 = vld [vmem:[%s569_s3 + $0x18] sm:$0xff]  }
   0x5   :  { %397 = vmatpush3.bf16.msra.mxu1 %v427_v5  ;;  %v423_v11 = vld [vmem:[%s567_s1 + $0x8] sm:$0xff]   ;;  %v424_v13 = vld [vmem:[%s567_s1] sm:$0xff]   ;;  %v432_v15 = vld [vmem:[%s569_s3 + $0x10] sm:$0xff]  }
   0x6   :  { %398 = vmatprep.subr.bf16.mxu1 %v428_v6  ;;  %v426_v14 = vld [vmem:[%s568_s0 + $0x8] sm:$0xff]   ;;  %v434_v17 = vld [vmem:[%s569_s3] sm:$0xff]   ;;  %v181_v33 = vld [vmem:[%s571_s4 + $0x10] sm:$0xff] }
   0x7   :  { %379 = vmatpush3.bf16.msra.mxu0 %v418_v1  ;;  %v433_v16 = vld [vmem:[%s569_s3 + $0x8] sm:$0xff]   ;;  %v329_v20 = vld [vmem:[%s570_s2] ss:$0 sm:$0xff]  ;;  %v182_v38 = vld [vmem:[%s571_s4 + $0x18] sm:$0xff] }
   0x8   :  { %380 = vmatprep.subr.bf16.mxu0 %v419_v2  ;;  %v179_v35 = vld [vmem:[%s571_s4] sm:$0xff]  ;;  %v180_v42 = vld [vmem:[%s571_s4 + $0x8] sm:$0xff] }
   0x9   :  { %399 = vmatpush3.bf16.msra.mxu1 %v428_v6 }
   0xa   :  { %400 = vmatprep.subr.bf16.mxu1 %v429_v9 }
   0xb   :  { %381 = vmatpush3.bf16.msra.mxu0 %v419_v2 }
   0xc   :  { %382 = vmatprep.subr.bf16.mxu0 %v420_v3 }
   0xd   :  { %401 = vmatpush3.bf16.msra.mxu1 %v429_v9 }
   0xe   :  { %402 = vmatprep.subr.bf16.mxu1 %v430_v10 }
   0xf   :  { %383 = vmatpush3.bf16.msra.mxu0 %v420_v3 }
  0x10   :  { %384 = vmatprep.subr.bf16.mxu0 %v421_v7 }
  0x11   :  { %403 = vmatpush3.bf16.msra.mxu1 %v430_v10 }
  0x12   :  { %404 = vmatprep.subr.bf16.mxu1 %v431_v12 }
  0x13   :  { %385 = vmatpush3.bf16.msra.mxu0 %v421_v7 }
  0x14   :  { %386 = vmatprep.subr.bf16.mxu0 %v422_v8 }
  0x15   :  { %405 = vmatpush3.bf16.msra.mxu1 %v431_v12 }
  0x16   :  { %406 = vmatprep.subr.bf16.mxu1 %v432_v15 }
  0x17   :  { %387 = vmatpush3.bf16.msra.mxu0 %v422_v8 }
  0x18   :  { %388 = vmatprep.subr.bf16.mxu0 %v423_v11 }
  0x19   :  { %407 = vmatpush3.bf16.msra.mxu1 %v432_v15 }
  0x1a   :  { %408 = vmatprep.subr.bf16.mxu1 %v433_v16 }
  0x1b   :  { %389 = vmatpush3.bf16.msra.mxu0 %v423_v11 }
  0x1c   :  { %390 = vmatprep.subr.bf16.mxu0 %v424_v13 }
  0x1d   :  { %409 = vmatpush3.bf16.msra.mxu1 %v433_v16 }
  0x1e   :  { %410 = vmatprep.subr.bf16.mxu1 %v434_v17 }
  0x1f   :  { %391 = vmatpush3.bf16.msra.mxu0 %v424_v13 }
  0x21   :  { %411 = vmatpush3.bf16.msra.mxu1 %v434_v17 }
  0x22   :  { %393 = vmatmul.mubr.bf16.vlgmr.msra.gmra.mxu0 %v426_v14 }
  0xe2   :  { %v394_v18 = vpop.f32.mrf.mxu0 }
  0xe3   :  { %v151_v24 = vadd.f32 %v394_v18, %v329_v20 }
  0xe4   :  { %v142_v19 = vpop.f32.mrf.mxu0 }
  0xe5   :  { %v143_v22 = vadd.f32 %v329_v20, %v142_v19  ;;  %v159_v30 = vmax.f32 %v151_v24, 0.0 }
  0xe6   :  { %v395_v21 = vpop.f32.mrf.mxu0 }
  0xe7   :  { %v154_v23 = vadd.f32 %v395_v21, %v329_v20  ;;  %v157_v28 = vmax.f32 %v143_v22, 0.0 }
  0xe8   :  { %v145_v25 = vpop.f32.mrf.mxu0 }
  0xe9   :  { %v146_v26 = vadd.f32 %v329_v20, %v145_v25  ;;  %v160_v27 = vmax.f32 %v154_v23, 0.0 }
  0xeb   :  { %v158_v29 = vmax.f32 %v146_v26, 0.0  ;;  %v162_v32 = vpack.c.bf16 %v160_v27, %v159_v30 }
  0xed   :  { %v161_v31 = vpack.c.bf16 %v158_v29, %v157_v28 }
  0xef   :  { %412 = vmatprep.mubr.bf16.mxu1 %v161_v31 }
  0xf0   :  { %413 = vmatmul.mubr.bf16.vlgmr.msra.gmra.mxu1 %v162_v32 }
 0x1b0   :  { %v414_v34 = vpop.f32.mrf.mxu1 }
 0x1b1   :  { %v274_v36 = vadd.f32 %v414_v34, %v181_v33 }
 0x1b2   :  { %v265_v37 = vpop.f32.mrf.mxu1 }
 0x1b3   :  { %v350_v39 = vmul.f32 -0.2, %v274_v36  ;;  %v266_v40 = vadd.f32 %v265_v37, %v179_v35 }
 0x1b4   :  { %v415_v41 = vpop.f32.mrf.mxu1 }
 0x1b5   :  { %v292_v43 = vmul.f32 1.442695, %v350_v39  ;;  %v348_v44 = vmul.f32 -0.2, %v266_v40  ;;  %v277_v45 = vadd.f32 %v415_v41, %v182_v38 }
 0x1b6   :  { %v268_v46 = vpop.f32.mrf.mxu1 }
 0x1b7   :  { %435 = vpow2.f32 %v292_v43  ;;  %v288_v47 = vmul.f32 1.442695, %v348_v44  ;;  %v351_v48 = vmul.f32 -0.2, %v277_v45  ;;  %v269_v49 = vadd.f32 %v268_v46, %v180_v42 }
 0x1b9   :  { %437 = vpow2.f32 %v288_v47  ;;  %v294_v50 = vmul.f32 1.442695, %v351_v48  ;;  %v349_v51 = vmul.f32 -0.2, %v269_v49 }
 0x1bb   :  { %439 = vpow2.f32 %v294_v50  ;;  %v290_v52 = vmul.f32 1.442695, %v349_v51 }
 0x1bd   :  { %441 = vpow2.f32 %v290_v52 }
 0x1c4   :  { %v436_v53 = vpop.eup %435 }
 0x1c5   :  { %v298_v54 = vadd.f32 1.0, %v436_v53 }
 0x1c6   :  { %v438_v55 = vpop.eup %437 }
 0x1c7   :  { %443 = vrcp.f32 %v298_v54  ;;  %v296_v56 = vadd.f32 1.0, %v438_v55 }
 0x1c8   :  { %v440_v57 = vpop.eup %439 }
 0x1c9   :  { %445 = vrcp.f32 %v296_v56  ;;  %v299_v58 = vadd.f32 1.0, %v440_v57 }
 0x1ca   :  { %v442_v59 = vpop.eup %441 }
 0x1cb   :  { %447 = vrcp.f32 %v299_v58  ;;  %v297_v60 = vadd.f32 1.0, %v442_v59 }
 0x1cd   :  { %449 = vrcp.f32 %v297_v60 }
 0x1d4   :  { %v444_v61 = vpop.eup %443 }
 0x1d5   :  { %vm310_vm1 = vcmp.gt.f32.partialorder %v444_v61, 0.5 }
 0x1d6   :  { %v446_v62 = vpop.eup %445  ;;  %v354_v0 = vsel %vm310_vm1, 1.0, %v451_v63 }
 0x1d7   :  { %323 = vst.msk [vmem:[%s572_s5 + $0x10] sm:$0xff] %vm320_vm0, %v354_v0  ;;  %vm308_vm2 = vcmp.gt.f32.partialorder %v446_v62, 0.5 }
 0x1d8   :  { %v448_v1 = vpop.eup %447  ;;  %v352_v2 = vsel %vm308_vm2, 1.0, %v451_v63 }
 0x1d9   :  { %321 = vst.msk [vmem:[%s572_s5] sm:$0xff] %vm320_vm0, %v352_v2  ;;  %vm311_vm3 = vcmp.gt.f32.partialorder %v448_v1, 0.5 }
 0x1da   :  { %v450_v3 = vpop.eup %449  ;;  %v355_v4 = vsel %vm311_vm3, 1.0, %v451_v63 }
 0x1db   :  { %324 = vst.msk [vmem:[%s572_s5 + $0x18] sm:$0xff] %vm320_vm0, %v355_v4  ;;  %vm309_vm4 = vcmp.gt.f32.partialorder %v450_v3, 0.5 }
 0x1dc   :  { %v353_v5 = vsel %vm309_vm4, 1.0, %v451_v63 }
 0x1dd   :  { %322 = vst.msk [vmem:[%s572_s5 + $0x8] sm:$0xff] %vm320_vm0, %v353_v5 }

</bundles_post_ra>
